<compile_context>
chip_gen: v7x
topology: tpu7x:2x2x1
jax: 0.10.0
libtpu: 0.0.40
codegen_flags: <defaults>
</compile_context>

<pallas_src>
import numpy as np
import jax
import jax.numpy as jnp
from jax.experimental import pallas as pl
from jax.experimental.pallas import tpu as pltpu


def make_photometric_kernel(mode, b_flag, b_delta, c_flag, c_alpha,
                            s_flag, s_alpha, h_flag, h_delta):
    """Builds the Pallas kernel with the (deterministic) random draws baked in."""
    eps = 1e-8
    # Hue shift in units of 60 degrees (the whole hue pipeline works in hp=h/60).
    hue_shift6 = 180.0 * h_delta / 60.0
    # The conditional add/sub below (replacing fmod) assumes |shift| < 360 deg,
    # guaranteed by the module (hue <= 1  ->  |shift| <= 180 deg).
    assert abs(hue_shift6) < 6.0

    def _pre(x):
        # mode == 0: contrast first, then brightness (both optional).
        if mode == 0 and c_flag:
            # x >= 0 (image in [0,1]) and c_alpha > 0: lower clip bound is a no-op.
            x = jnp.minimum(x * c_alpha, 1.0)
        if b_flag:
            x = jnp.clip(x + b_delta, 0.0, 1.0)
        return x

    def kernel(img_ref, out_ref):
        r = _pre(img_ref[0].astype(jnp.float32))   # (TH, TW)
        g = _pre(img_ref[1].astype(jnp.float32))
        b = _pre(img_ref[2].astype(jnp.float32))

        # ---- RGB -> (hue, chroma, value); saturation never materialized ----
        v = jnp.maximum(jnp.maximum(r, g), b)
        mn = jnp.minimum(jnp.minimum(r, g), b)
        d = v - mn                                 # chroma before saturation jitter

        # One reciprocal total: approx (EUP slot) + one Newton-Raphson step.
        den = d + eps
        inv = pl.reciprocal(den, approx=True)
        inv = inv * (2.0 - den * inv)

        # Select numerator/offset first, then a single multiply-add.
        # is_r == (r == v) has torch.max(0) first-max tie semantics.
        is_r = r == v
        is_g = g >= b
        num = jnp.where(is_r, g - b, jnp.where(is_g, b - r, r - g))
        off = jnp.where(is_r, 0.0, jnp.where(is_g, 2.0, 4.0))
        hp = num * inv + off                       # hue/60, candidates in (-1, 5)
        hp = jnp.where(hp < 0.0, hp + 6.0, hp)     # "% 360" == one conditional add

        # ---- hue jitter ----
        if h_flag:
            hp = hp + hue_shift6
            if hue_shift6 > 0.0:
                hp = jnp.where(hp >= 6.0, hp - 6.0, hp)
            elif hue_shift6 < 0.0:
                hp = jnp.where(hp < 0.0, hp + 6.0, hp)

        # ---- saturation jitter via the chroma identity ----
        # c = v * clip(s*alpha, 0, 1) == min(alpha*(v-min), v)   (v >= 0, alpha > 0)
        if s_flag:
            c = jnp.minimum(d * s_alpha, v)
        else:
            c = d
        m = v - c

        # mode == 1: contrast last; scale c and m once instead of 3 channels.
        if mode == 1 and c_flag:
            c = c * c_alpha
            m = m * c_alpha

        # ---- HSV -> RGB, closed form (equals the 6-entry table for hp in [0,6)) ----
        r_ = m + c * jnp.clip(jnp.abs(hp - 3.0) - 1.0, 0.0, 1.0)
        g_ = m + c * jnp.clip(2.0 - jnp.abs(hp - 2.0), 0.0, 1.0)
        b_ = m + c * jnp.clip(2.0 - jnp.abs(hp - 4.0), 0.0, 1.0)

        if mode == 1 and c_flag:
            # outputs >= 0 by construction: only the upper clip bound matters.
            r_ = jnp.minimum(r_, 1.0)
            g_ = jnp.minimum(g_, 1.0)
            b_ = jnp.minimum(b_, 1.0)

        # Per-channel stores straight from live vregs (no (3,TH,TW) stack temp).
        out_ref[0] = r_.astype(out_ref.dtype)
        out_ref[1] = g_.astype(out_ref.dtype)
        out_ref[2] = b_.astype(out_ref.dtype)

    return kernel


def _roundup(x, m):
    return ((x + m - 1) // m) * m


def _pick_tiles(Hw, Ww, max_block_elems):
    """Pick (TH, TW) for a (3, Hw, Ww) work array with Ww % 128 == 0.

    TH is a multiple of 8 (or the full Hw), TW a multiple of 128; the grid uses
    cdiv so ragged last blocks are fine.  At least 2 grid steps are forced
    along a parallel axis when possible (v7x has 2 TensorCores).
    """
    # Lane tile: multiple of 128, <= 512 (elementwise roofline flattens above).
    if Ww <= 512:
        tw = Ww
    else:
        tw = next(c for c in (512, 384, 256, 128) if Ww % c == 0)
    # Sublane tile: largest multiple of 8 within the element budget.
    cap = max(8, (max_block_elems // tw) // 8 * 8)
    th = Hw if Hw <= cap else cap
    # Megacore: make sure both v7x TensorCores get work when the image would
    # otherwise collapse to a single grid step.
    if pl.cdiv(Hw, th) * pl.cdiv(Ww, tw) < 2:
        if Hw > 8:
            th = max(8, _roundup(pl.cdiv(Hw, 2), 8))
        elif Ww > 128:
            tw = max(128, _roundup(pl.cdiv(Ww, 2), 128))
    return th, tw


def photometric_distortion_pallas(image, bboxes, labels, params, *,
                                  max_block_elems=128 * 1024):
    """image: (3, H, W) float32 in [0, 1]; bboxes / labels pass through."""
    C, H, W = image.shape
    assert C == 3
    dtype = image.dtype

    # Lane-dense working layout: guarantee the last (lane) dim is a multiple of
    # 128 so output stores are full (unmasked) vst.  The op is pointwise, so
    # pixel geometry is irrelevant; for W % 128 != 0 flatten to (3, R, L) and
    # undo afterwards (pad the tail if H*W is not a multiple of L).
    if W % 128 == 0:
        work, Hw, Ww, flattened = image, H, W, False
    else:
        total = H * W
        L = 512 if total >= 8 * 512 else 128
        R = pl.cdiv(total, L)
        pad = R * L - total
        flat = image.reshape(C, total)
        if pad:
            flat = jnp.pad(flat, ((0, 0), (0, pad)))
        work = flat.reshape(C, R, L)
        Hw, Ww, flattened = R, L, True

    th, tw = _pick_tiles(Hw, Ww, max_block_elems)
    grid = (pl.cdiv(Hw, th), pl.cdiv(Ww, tw))
    kernel = make_photometric_kernel(**params)

    # VMEM: in+out double buffers + ~12 materialized (TH, TW) f32 temporaries.
    # Always set the limit explicitly (v5e's scoped default is only 16 MiB);
    # cap at 40 MiB to stay inside v7x's 64 MiB physical VMEM.
    block_bytes = C * th * tw * 4
    est_bytes = 4 * block_bytes + 12 * th * tw * 4
    vmem_limit = int(min(max(2 * est_bytes, 32 * 1024 * 1024), 40 * 1024 * 1024))

    out = pl.pallas_call(
        kernel,
        out_shape=jax.ShapeDtypeStruct((C, Hw, Ww), dtype),
        grid_spec=pltpu.PrefetchScalarGridSpec(
            num_scalar_prefetch=0,
            grid=grid,
            in_specs=[pl.BlockSpec((C, th, tw), lambda i, j: (0, i, j))],
            out_specs=pl.BlockSpec((C, th, tw), lambda i, j: (0, i, j)),
        ),
        compiler_params=pltpu.CompilerParams(
            dimension_semantics=("parallel", "parallel"),
            vmem_limit_bytes=vmem_limit),
    )(work)

    if flattened:
        out = out.reshape(C, Hw * Ww)[:, :H * W].reshape(C, H, W)
    return out, bboxes, labels


def photometric_distortion_ref(image, params):
    """Pure-jnp reference using the original torch-style table/gather math."""
    mode = params["mode"]
    img = image.astype(jnp.float32)

    def contrast(x):
        return jnp.clip(x * params["c_alpha"], 0.0, 1.0)

    if mode == 0 and params["c_flag"]:
        img = contrast(img)
    if params["b_flag"]:
        img = jnp.clip(img + params["b_delta"], 0.0, 1.0)

    r, g, b = img[0], img[1], img[2]
    v = jnp.maximum(jnp.maximum(r, g), b)
    mn = jnp.minimum(jnp.minimum(r, g), b)
    s = jnp.where(v != 0, (v - mn) / v, jnp.zeros_like(v))
    den = v - mn + 1e-8
    h_cand = jnp.stack([60 * (g - b) / den,
                        60 * (b - r) / den + 120,
                        60 * (r - g) / den + 240], 0)
    amax = jnp.argmax(img, axis=0)
    h = jnp.take_along_axis(h_cand, amax[None], axis=0)[0] % 360.0

    if params["s_flag"]:
        s = jnp.clip(s * params["s_alpha"], 0.0, 1.0)
    if params["h_flag"]:
        h = (h + 180.0 * params["h_delta"]) % 360.0

    c = v * s
    x = c * (1 - jnp.abs((h / 60) % 2 - 1))
    m = v - c
    z = jnp.zeros_like(c)
    hid = jnp.clip((h / 60).astype(jnp.int32), 0, 5)[None]
    r_ = jnp.take_along_axis(jnp.stack([c, x, z, z, x, c], 0), hid, 0)[0]
    g_ = jnp.take_along_axis(jnp.stack([x, c, c, x, z, z], 0), hid, 0)[0]
    b_ = jnp.take_along_axis(jnp.stack([z, z, x, c, c, x], 0), hid, 0)[0]
    out = jnp.stack([r_ + m, g_ + m, b_ + m], 0)
    if mode == 1 and params["c_flag"]:
        out = contrast(out)
    return out


if __name__ == "__main__":
    key = jax.random.PRNGKey(0)
    k_img, k_box, k_lbl, k_img2 = jax.random.split(key, 4)

    H, W = 32, 256
    image = jax.random.uniform(k_img, (3, H, W), dtype=jnp.float32)     # RGB in [0,1]
    bboxes = jax.random.uniform(k_box, (5, 4), dtype=jnp.float32) * H   # pass-through
    labels = jax.random.randint(k_lbl, (5,), 0, 10)                     # pass-through

    # Deterministic stand-ins for the module's host-side random draws
    # (all ops enabled so every branch of the pipeline is exercised).
    params = dict(
        mode=0,
        b_flag=True, b_delta=0.0625,   # uniform(-0.125, 0.125)
        c_flag=True, c_alpha=1.25,     # uniform(0.5, 1.5)
        s_flag=True, s_alpha=1.20,     # uniform(0.5, 1.5)
        h_flag=True, h_delta=0.05,     # uniform(-0.1, 0.1)
    )

    # Tolerance 1e-4: approx reciprocal + one Newton step and a few reassociated
    # (but mathematically identical) expressions; plenty for image augmentation.
    TOL = 1e-4

    ref = jax.block_until_ready(photometric_distortion_ref(image, params))

    # 1) Default tiling (W multiple of 128, grid split for the 2 v7x cores).
    out_img, out_boxes, out_lbls = photometric_distortion_pallas(
        image, bboxes, labels, params)
    out_img = jax.block_until_ready(out_img)
    np.testing.assert_allclose(np.asarray(out_img), np.asarray(ref),
                               rtol=TOL, atol=TOL)

    # 2) Forced small tiles to exercise the multi-step (row-tiled) grid path.
    out_img2, _, _ = photometric_distortion_pallas(
        image, bboxes, labels, params, max_block_elems=8 * 256)
    out_img2 = jax.block_until_ready(out_img2)
    np.testing.assert_allclose(np.asarray(out_img2), np.asarray(ref),
                               rtol=TOL, atol=TOL)

    # 3) mode==1 (contrast last) + negative hue shift + W not a multiple of 128
    #    (exercises the lane-dense flatten/pad path and ragged last block).
    H3, W3 = 24, 200
    image3 = jax.random.uniform(k_img2, (3, H3, W3), dtype=jnp.float32)
    params2 = dict(mode=1, b_flag=True, b_delta=-0.05,
                   c_flag=True, c_alpha=0.80,
                   s_flag=True, s_alpha=0.70,
                   h_flag=True, h_delta=-0.08)
    out_img3, _, _ = photometric_distortion_pallas(image3, bboxes, labels, params2)
    ref3 = photometric_distortion_ref(image3, params2)
    np.testing.assert_allclose(np.asarray(jax.block_until_ready(out_img3)),
                               np.asarray(jax.block_until_ready(ref3)),
                               rtol=TOL, atol=TOL)

    print("KERNEL_OK")
</pallas_src>

<mosaic_0001>
module attributes {stable_mosaic.version = 11 : i64} {
  func.func @kernel(%arg0: i32, %arg1: i32, %arg2: memref<3x16x256xf32, #tpu.memory_space<vmem>>, %arg3: memref<3x16x256xf32, #tpu.memory_space<vmem>>) attributes {dimension_semantics = [#tpu.dimension_semantics<parallel>, #tpu.dimension_semantics<parallel>], iteration_bounds = array<i64: 2, 1>, scalar_prefetch = 0 : i64, scratch_operands = 0 : i64, tpu.core_type = #tpu.core_type<tc>, window_params = [{transform_indices = @transform_0, window_bounds = array<i64: 3, 16, 256>}, {transform_indices = @transform_1, window_bounds = array<i64: 3, 16, 256>}]} {
    %c0 = arith.constant 0 : index
    %c0_0 = arith.constant 0 : index
    %c0_1 = arith.constant 0 : index
    %0 = vector.load %arg2[%c0, %c0_0, %c0_1] : memref<3x16x256xf32, #tpu.memory_space<vmem>>, vector<1x16x256xf32>
    %1 = vector.shape_cast %0 : vector<1x16x256xf32> to vector<16x256xf32>
    %cst = arith.constant 1.250000e+00 : f32
    %2 = vector.broadcast %cst : f32 to vector<16x256xf32>
    %3 = arith.mulf %1, %2 : vector<16x256xf32>
    %cst_2 = arith.constant 1.000000e+00 : f32
    %4 = vector.broadcast %cst_2 : f32 to vector<16x256xf32>
    %5 = arith.minimumf %3, %4 : vector<16x256xf32>
    %cst_3 = arith.constant 6.250000e-02 : f32
    %6 = vector.broadcast %cst_3 : f32 to vector<16x256xf32>
    %7 = arith.addf %5, %6 : vector<16x256xf32>
    %cst_4 = arith.constant 0.000000e+00 : f32
    %cst_5 = arith.constant 1.000000e+00 : f32
    %8 = vector.broadcast %cst_4 : f32 to vector<16x256xf32>
    %9 = arith.maximumf %8, %7 : vector<16x256xf32>
    %10 = vector.broadcast %cst_5 : f32 to vector<16x256xf32>
    %11 = arith.minimumf %10, %9 : vector<16x256xf32>
    %c1 = arith.constant 1 : index
    %c0_6 = arith.constant 0 : index
    %c0_7 = arith.constant 0 : index
    %12 = vector.load %arg2[%c1, %c0_6, %c0_7] : memref<3x16x256xf32, #tpu.memory_space<vmem>>, vector<1x16x256xf32>
    %13 = vector.shape_cast %12 : vector<1x16x256xf32> to vector<16x256xf32>
    %cst_8 = arith.constant 1.250000e+00 : f32
    %14 = vector.broadcast %cst_8 : f32 to vector<16x256xf32>
    %15 = arith.mulf %13, %14 : vector<16x256xf32>
    %cst_9 = arith.constant 1.000000e+00 : f32
    %16 = vector.broadcast %cst_9 : f32 to vector<16x256xf32>
    %17 = arith.minimumf %15, %16 : vector<16x256xf32>
    %cst_10 = arith.constant 6.250000e-02 : f32
    %18 = vector.broadcast %cst_10 : f32 to vector<16x256xf32>
    %19 = arith.addf %17, %18 : vector<16x256xf32>
    %cst_11 = arith.constant 0.000000e+00 : f32
    %cst_12 = arith.constant 1.000000e+00 : f32
    %20 = vector.broadcast %cst_11 : f32 to vector<16x256xf32>
    %21 = arith.maximumf %20, %19 : vector<16x256xf32>
    %22 = vector.broadcast %cst_12 : f32 to vector<16x256xf32>
    %23 = arith.minimumf %22, %21 : vector<16x256xf32>
    %c2 = arith.constant 2 : index
    %c0_13 = arith.constant 0 : index
    %c0_14 = arith.constant 0 : index
    %24 = vector.load %arg2[%c2, %c0_13, %c0_14] : memref<3x16x256xf32, #tpu.memory_space<vmem>>, vector<1x16x256xf32>
    %25 = vector.shape_cast %24 : vector<1x16x256xf32> to vector<16x256xf32>
    %cst_15 = arith.constant 1.250000e+00 : f32
    %26 = vector.broadcast %cst_15 : f32 to vector<16x256xf32>
    %27 = arith.mulf %25, %26 : vector<16x256xf32>
    %cst_16 = arith.constant 1.000000e+00 : f32
    %28 = vector.broadcast %cst_16 : f32 to vector<16x256xf32>
    %29 = arith.minimumf %27, %28 : vector<16x256xf32>
    %cst_17 = arith.constant 6.250000e-02 : f32
    %30 = vector.broadcast %cst_17 : f32 to vector<16x256xf32>
    %31 = arith.addf %29, %30 : vector<16x256xf32>
    %cst_18 = arith.constant 0.000000e+00 : f32
    %cst_19 = arith.constant 1.000000e+00 : f32
    %32 = vector.broadcast %cst_18 : f32 to vector<16x256xf32>
    %33 = arith.maximumf %32, %31 : vector<16x256xf32>
    %34 = vector.broadcast %cst_19 : f32 to vector<16x256xf32>
    %35 = arith.minimumf %34, %33 : vector<16x256xf32>
    %36 = arith.maximumf %11, %23 : vector<16x256xf32>
    %37 = arith.maximumf %36, %35 : vector<16x256xf32>
    %38 = arith.minimumf %11, %23 : vector<16x256xf32>
    %39 = arith.minimumf %38, %35 : vector<16x256xf32>
    %40 = arith.subf %37, %39 : vector<16x256xf32>
    %cst_20 = arith.constant 9.99999993E-9 : f32
    %41 = vector.broadcast %cst_20 : f32 to vector<16x256xf32>
    %42 = arith.addf %40, %41 : vector<16x256xf32>
    %43 = tpu.reciprocal %42 {approx = true} : vector<16x256xf32> -> vector<16x256xf32>
    %44 = arith.mulf %42, %43 : vector<16x256xf32>
    %cst_21 = arith.constant 2.000000e+00 : f32
    %45 = vector.broadcast %cst_21 : f32 to vector<16x256xf32>
    %46 = arith.subf %45, %44 : vector<16x256xf32>
    %47 = arith.mulf %43, %46 : vector<16x256xf32>
    %48 = arith.cmpf oeq, %11, %37 : vector<16x256xf32>
    %49 = arith.cmpf oge, %23, %35 : vector<16x256xf32>
    %50 = arith.subf %23, %35 : vector<16x256xf32>
    %51 = arith.subf %35, %11 : vector<16x256xf32>
    %52 = arith.subf %11, %23 : vector<16x256xf32>
    %53 = arith.select %49, %51, %52 : vector<16x256xi1>, vector<16x256xf32>
    %54 = arith.select %48, %50, %53 : vector<16x256xi1>, vector<16x256xf32>
    %cst_22 = arith.constant 2.000000e+00 : f32
    %cst_23 = arith.constant 4.000000e+00 : f32
    %55 = vector.broadcast %cst_22 : f32 to vector<16x256xf32>
    %56 = vector.broadcast %cst_23 : f32 to vector<16x256xf32>
    %57 = arith.select %49, %55, %56 : vector<16x256xi1>, vector<16x256xf32>
    %cst_24 = arith.constant 0.000000e+00 : f32
    %58 = vector.broadcast %cst_24 : f32 to vector<16x256xf32>
    %59 = arith.select %48, %58, %57 : vector<16x256xi1>, vector<16x256xf32>
    %60 = arith.mulf %54, %47 : vector<16x256xf32>
    %61 = arith.addf %60, %59 : vector<16x256xf32>
    %cst_25 = arith.constant 0.000000e+00 : f32
    %62 = vector.broadcast %cst_25 : f32 to vector<16x256xf32>
    %63 = arith.cmpf olt, %61, %62 : vector<16x256xf32>
    %cst_26 = arith.constant 6.000000e+00 : f32
    %64 = vector.broadcast %cst_26 : f32 to vector<16x256xf32>
    %65 = arith.addf %61, %64 : vector<16x256xf32>
    %66 = arith.select %63, %65, %61 : vector<16x256xi1>, vector<16x256xf32>
    %cst_27 = arith.constant 1.500000e-01 : f32
    %67 = vector.broadcast %cst_27 : f32 to vector<16x256xf32>
    %68 = arith.addf %66, %67 : vector<16x256xf32>
    %cst_28 = arith.constant 6.000000e+00 : f32
    %69 = vector.broadcast %cst_28 : f32 to vector<16x256xf32>
    %70 = arith.cmpf oge, %68, %69 : vector<16x256xf32>
    %cst_29 = arith.constant 6.000000e+00 : f32
    %71 = vector.broadcast %cst_29 : f32 to vector<16x256xf32>
    %72 = arith.subf %68, %71 : vector<16x256xf32>
    %73 = arith.select %70, %72, %68 : vector<16x256xi1>, vector<16x256xf32>
    %cst_30 = arith.constant 1.200000e+00 : f32
    %74 = vector.broadcast %cst_30 : f32 to vector<16x256xf32>
    %75 = arith.mulf %40, %74 : vector<16x256xf32>
    %76 = arith.minimumf %75, %37 : vector<16x256xf32>
    %77 = arith.subf %37, %76 : vector<16x256xf32>
    %cst_31 = arith.constant 3.000000e+00 : f32
    %78 = vector.broadcast %cst_31 : f32 to vector<16x256xf32>
    %79 = arith.subf %73, %78 : vector<16x256xf32>
    %80 = math.absf %79 : vector<16x256xf32>
    %cst_32 = arith.constant 1.000000e+00 : f32
    %81 = vector.broadcast %cst_32 : f32 to vector<16x256xf32>
    %82 = arith.subf %80, %81 : vector<16x256xf32>
    %cst_33 = arith.constant 0.000000e+00 : f32
    %cst_34 = arith.constant 1.000000e+00 : f32
    %83 = vector.broadcast %cst_33 : f32 to vector<16x256xf32>
    %84 = arith.maximumf %83, %82 : vector<16x256xf32>
    %85 = vector.broadcast %cst_34 : f32 to vector<16x256xf32>
    %86 = arith.minimumf %85, %84 : vector<16x256xf32>
    %87 = arith.mulf %76, %86 : vector<16x256xf32>
    %88 = arith.addf %77, %87 : vector<16x256xf32>
    %cst_35 = arith.constant 2.000000e+00 : f32
    %89 = vector.broadcast %cst_35 : f32 to vector<16x256xf32>
    %90 = arith.subf %73, %89 : vector<16x256xf32>
    %91 = math.absf %90 : vector<16x256xf32>
    %cst_36 = arith.constant 2.000000e+00 : f32
    %92 = vector.broadcast %cst_36 : f32 to vector<16x256xf32>
    %93 = arith.subf %92, %91 : vector<16x256xf32>
    %cst_37 = arith.constant 0.000000e+00 : f32
    %cst_38 = arith.constant 1.000000e+00 : f32
    %94 = vector.broadcast %cst_37 : f32 to vector<16x256xf32>
    %95 = arith.maximumf %94, %93 : vector<16x256xf32>
    %96 = vector.broadcast %cst_38 : f32 to vector<16x256xf32>
    %97 = arith.minimumf %96, %95 : vector<16x256xf32>
    %98 = arith.mulf %76, %97 : vector<16x256xf32>
    %99 = arith.addf %77, %98 : vector<16x256xf32>
    %cst_39 = arith.constant 4.000000e+00 : f32
    %100 = vector.broadcast %cst_39 : f32 to vector<16x256xf32>
    %101 = arith.subf %73, %100 : vector<16x256xf32>
    %102 = math.absf %101 : vector<16x256xf32>
    %cst_40 = arith.constant 2.000000e+00 : f32
    %103 = vector.broadcast %cst_40 : f32 to vector<16x256xf32>
    %104 = arith.subf %103, %102 : vector<16x256xf32>
    %cst_41 = arith.constant 0.000000e+00 : f32
    %cst_42 = arith.constant 1.000000e+00 : f32
    %105 = vector.broadcast %cst_41 : f32 to vector<16x256xf32>
    %106 = arith.maximumf %105, %104 : vector<16x256xf32>
    %107 = vector.broadcast %cst_42 : f32 to vector<16x256xf32>
    %108 = arith.minimumf %107, %106 : vector<16x256xf32>
    %109 = arith.mulf %76, %108 : vector<16x256xf32>
    %110 = arith.addf %77, %109 : vector<16x256xf32>
    %c0_43 = arith.constant 0 : index
    %c0_44 = arith.constant 0 : index
    %c0_45 = arith.constant 0 : index
    %111 = vector.load %arg3[%c0_43, %c0_44, %c0_45] : memref<3x16x256xf32, #tpu.memory_space<vmem>>, vector<1x16x256xf32>
    %112 = vector.shape_cast %111 : vector<1x16x256xf32> to vector<16x256xf32>
    %113 = vector.shape_cast %88 : vector<16x256xf32> to vector<1x16x256xf32>
    tpu.vector_store %arg3[%c0_43, %c0_44, %c0_45], %113 {strides = array<i32>} : memref<3x16x256xf32, #tpu.memory_space<vmem>>, vector<1x16x256xf32>,
    %c1_46 = arith.constant 1 : index
    %c0_47 = arith.constant 0 : index
    %c0_48 = arith.constant 0 : index
    %114 = vector.load %arg3[%c1_46, %c0_47, %c0_48] : memref<3x16x256xf32, #tpu.memory_space<vmem>>, vector<1x16x256xf32>
    %115 = vector.shape_cast %114 : vector<1x16x256xf32> to vector<16x256xf32>
    %116 = vector.shape_cast %99 : vector<16x256xf32> to vector<1x16x256xf32>
    tpu.vector_store %arg3[%c1_46, %c0_47, %c0_48], %116 {strides = array<i32>} : memref<3x16x256xf32, #tpu.memory_space<vmem>>, vector<1x16x256xf32>,
    %c2_49 = arith.constant 2 : index
    %c0_50 = arith.constant 0 : index
    %c0_51 = arith.constant 0 : index
    %117 = vector.load %arg3[%c2_49, %c0_50, %c0_51] : memref<3x16x256xf32, #tpu.memory_space<vmem>>, vector<1x16x256xf32>
    %118 = vector.shape_cast %117 : vector<1x16x256xf32> to vector<16x256xf32>
    %119 = vector.shape_cast %110 : vector<16x256xf32> to vector<1x16x256xf32>
    tpu.vector_store %arg3[%c2_49, %c0_50, %c0_51], %119 {strides = array<i32>} : memref<3x16x256xf32, #tpu.memory_space<vmem>>, vector<1x16x256xf32>,
    return
  }
  func.func @transform_0(%arg0: i32, %arg1: i32) -> (i32, i32, i32) {
    %c0_i32 = arith.constant 0 : i32
    %c0_i32_0 = arith.constant 0 : i32
    return %c0_i32, %arg0, %arg1 : i32, i32, i32
  }
  func.func @transform_1(%arg0: i32, %arg1: i32) -> (i32, i32, i32) {
    %c0_i32 = arith.constant 0 : i32
    %c0_i32_0 = arith.constant 0 : i32
    return %c0_i32, %arg0, %arg1 : i32, i32, i32
  }
}

</mosaic_0001>

<bundles_post_ra>
// kernel: tpu_custom_call.1
= control target key start
LH: loop header
LB: loop body
LE: loop exit
PB: predicated region body
PF: predicated region fallthrough
CT: control target
= control target key end

     0   :  { %6 = vsyncpa [#allocation3], 0  ;;  %s1193_s0 = inlined_call_operand.hbm [shape: f32[3,32,256], index: 0, kind: input, shape index: {}]   ;;  %s1194_s1 = inlined_call_operand.hbm [shape: f32[3,32,256], index: 1, kind: output, shape index: {}]  }
   0x1   :  { %8 = vsyncpa [#allocation3 + $0x1], 0 }
   0x2   :  { %9 = vsyncpa [#allocation4], 0 }
   0x3   :  { %11 = vsyncpa [#allocation4 + $0x1], 0  ;;  %s841_s6 = smov 0   ;;  %s843_s7 = smov 0  }
   0x4   :  { %s845_s8 = smov 0   ;;  %s847_s9 = smov 0  }
   0x5   :  { %s849_s10 = smov 0   ;;  %s851_s11 = smov 0  }
   0x6 LB: > { %s612_s12 = sadd.s32 4294967295, %s815_s11   ;;  %s613_s13 = sadd.s32 4294967294, %s815_s11   ;;  %s815_s11 = sphi %s851_s11, %s17_s11   ;;  %s811_s10 = sphi %s849_s10, %s1203_s10   ;;  %s807_s9 = sphi %s847_s9, %s1202_s9   ;;  %s803_s8 = sphi %s845_s8, %s1201_s8   ;;  %s799_s7 = sphi %s843_s7, %s1200_s7   ;;  %s795_s6 = sphi %s841_s6, %s1199_s6  }
   0x7   : > { %s29_s14 = sadd.s32 1, %s811_s10  ;;  %s38_s15 = sadd.s32 1, %s803_s8 }
   0x8   : > { %p31_p0 = scmp.ge.s32.totalorder %s29_s14, 2  ;;  %p45_p1 = scmp.ne.s32.totalorder %s803_s8, %s799_s7 }
   0x9   : > { %p46_p2 = scmp.eq.s32.totalorder %s815_s11, 0  ;;  %p51_p3 = scmp.ne.s32.totalorder %s799_s7, %s795_s6 }
   0xa   : > { %s1205_s14 = smov (%p31_p0, %s29_s14), 0  ;;  %p52_p5 = scmp.eq.s32.totalorder %s612_s12, 0 }
   0xb   : > { %p882_p4 = por %p46_p2, %p45_p1  ;;  %s33_s17 = ssub.s32 %s811_s10, %s1205_s14 }
   0xc   : > { %p77_p6 = scmp.eq.s32.totalorder %s612_s12, 1  ;;  %p36_p7 = scmp.eq.s32.totalorder %s33_s17, 0 }
   0xd   : > { %p888_p8 = por %p52_p5, %p51_p3  ;;  %p83_p10 = scmp.eq.s32.totalorder %s613_s13, 1 }
   0xe   : > { %p892_p9 = por %p77_p6, %p45_p1  ;;  %p615_p12 = scmp.ge.s32.totalorder %s815_s11, 2 }
   0xf   : > { %s897_s20 = scalar_select %p36_p7, %s803_s8, %s38_s15  }
  0x10   : > { %p899_p11 = por %p83_p10, %p51_p3  ;;  %99 = sbr.rel (%p615_p12) target bundleno = 37 (0x25), region = 16 }
  0x17   : > { %s103_s22 = sand.u32 1, %s803_s8   ;;  %s664_s24 = sshll.u32 %s811_s10, 9 }
  0x18   : > { %s667_s23 = smul.u32 96, %s103_s22  ;;  %s817_s25 = smov 1024  }
  0x19   : > { %670 = sst [smem:[#allocation7]] (%p882_p4), %s817_s25  ;;  %s116_s29 = scalar_lea.hbm %s1193_s0, %s664_s24 }
  0x1a   : > { %s669_s26 = scalar_select %p882_p4, [#allocation0], [#allocation10] }
  0x1b   : > { %s107_s2 = scalar_lea.vmem [#allocation2], %s667_s23  ;;  %s818_s4 = smov 512  }
  0x1c   : > { %s121_s30 = sld [smem:[%s669_s26]]   ;;  %s129_s3 = sshll.u32 %s107_s2, 4  ;;  %s130_s3 = int_to_ptr.vmem [resolvable:$true] %s129_s3 }
  0x1d   : > { %671 = sst [smem:[#allocation7 + $0x1]] (%p882_p4), %s818_s4  ;;  %s819_s5 = smov 2  }
  0x1e   : > { %672 = sst [smem:[#allocation7 + $0x2]] (%p882_p4), %s819_s5  ;;  %s820_s12 = smov 256  }
  0x1f   : > { %673 = sst [smem:[#allocation7 + $0x3]] (%p882_p4), %s820_s12  ;;  %s821_s13 = smov 16  }
  0x20   : > { %674 = sst [smem:[#allocation7 + $0x4]] (%p882_p4), %s820_s12  ;;  %s104_s23 = scalar_lea.sflag [#allocation3], %s103_s22 }
  0x21   : > { %675 = sst [smem:[#allocation7 + $0x5]] (%p882_p4), %s821_s13  ;;  %s822_s24 = smov [#allocation6]  }
  0x22   : > { %s619_s15 = sshll.u32 %s121_s30, 26 }
  0x23   : > { %s620_s17 = sadd.s32 134217728, %s619_s15 }
  0x24   : > { %676 = dma.general (%p882_p4), %s116_s29, 1536, %s130_s3, %s104_s23, %s822_s24, [#allocation7], %s620_s17, 0  }
  0x25 PF: > { %p621_p13 = scmp.ge.s32.totalorder %s815_s11, 1  ;;  %p150_p0 = scmp.lt.s32.totalorder %s815_s11, 3 }
  0x27   : > { %p151_p1 = pnand %p621_p13, %p150_p0 }
  0x28   : > { %s930_s25 = sand.u32 (!%p151_p1), 1, %s799_s7  }
  0x29   : > { %154 = sbr.rel (%p151_p1) target bundleno = 145 (0x91), region = 24  ;;  %s157_s27 = scalar_lea.sflag (!%p151_p1), [#allocation3], %s930_s25 }
  0x2a   : > { %s668_s26 = smul.u32 (!%p151_p1), 96, %s930_s25 }
  0x2c   : > { %s936_s22 = scalar_lea.vmem (!%p151_p1), [#allocation2], %s668_s26 }
  0x30   : > { %786 = dma.done.wait (%p888_p8), %s157_s27, 1536  }
  0x31   : > { %788 = vsyncadd (%p888_p8), %s157_s27, 4294965760  ;;  %v183_v0 = vld [vmem:[%s936_s22] sm:$0xff]  ;;  %v184_v6 = vld [vmem:[%s936_s22 + $0x8] sm:$0xff]  ;;  %s1126_s16 = scalar_lea.vmem [#allocation5], %s668_s26  ;;  %s480_s18 = scalar_lea.sflag [#allocation4], %s930_s25 }
  0x32   : > { %v622_v1 = vld [vmem:[%s936_s22 + $0x20] sm:$0xff]  ;;  %v187_v3 = vmul.f32 1.25, %v183_v0  ;;  %v623_v7 = vld [vmem:[%s936_s22 + $0x28] sm:$0xff]  ;;  %v188_v9 = vmul.f32 1.25, %v184_v6  ;;  %v185_v12 = vld [vmem:[%s936_s22 + $0x10] sm:$0xff] }
  0x33   : > { %v626_v2 = vld [vmem:[%s936_s22 + $0x40] sm:$0xff]  ;;  %v212_v4 = vmul.f32 1.25, %v622_v1  ;;  %v627_v8 = vld [vmem:[%s936_s22 + $0x48] sm:$0xff]  ;;  %v213_v10 = vmul.f32 1.25, %v623_v7  ;;  %v624_v13 = vld [vmem:[%s936_s22 + $0x30] sm:$0xff]  ;;  %v189_v20 = vmul.f32 1.25, %v185_v12 }
  0x34   : > { %v237_v5 = vmul.f32 1.25, %v626_v2  ;;  %v238_v11 = vmul.f32 1.25, %v627_v8  ;;  %v191_v14 = vmin.f32 %v187_v3, 1.0  ;;  %v192_v17 = vmin.f32 %v188_v9, 1.0  ;;  %v628_v57 = vld [vmem:[%s936_s22 + $0x50] sm:$0xff]  ;;  %v186_v58 = vld [vmem:[%s936_s22 + $0x18] sm:$0xff] }
  0x35   : > { %v216_v15 = vmin.f32 %v212_v4, 1.0  ;;  %v217_v18 = vmin.f32 %v213_v10, 1.0  ;;  %v214_v24 = vmul.f32 1.25, %v624_v13  ;;  %v193_v34 = vmin.f32 %v189_v20, 1.0  ;;  %v625_v60 = vld [vmem:[%s936_s22 + $0x38] sm:$0xff] }
  0x36   : > { %v241_v16 = vmin.f32 %v237_v5, 1.0  ;;  %v242_v19 = vmin.f32 %v238_v11, 1.0  ;;  %v195_v21 = vadd.f32 0.0625, %v191_v14  ;;  %v196_v25 = vadd.f32 0.0625, %v192_v17  ;;  %v629_v61 = vld [vmem:[%s936_s22 + $0x58] sm:$0xff] }
  0x37   : > { %v220_v22 = vadd.f32 0.0625, %v216_v15  ;;  %v221_v26 = vadd.f32 0.0625, %v217_v18  ;;  %v218_v38 = vmin.f32 %v214_v24, 1.0  ;;  %v197_v45 = vadd.f32 0.0625, %v193_v34 }
  0x38   : > { %v245_v23 = vadd.f32 0.0625, %v241_v16  ;;  %v246_v27 = vadd.f32 0.0625, %v242_v19  ;;  %v199_v28 = vmax.f32 %v195_v21, 0.0  ;;  %v200_v31 = vmax.f32 %v196_v25, 0.0 }
  0x39   : > { %v224_v29 = vmax.f32 %v220_v22, 0.0  ;;  %v225_v32 = vmax.f32 %v221_v26, 0.0  ;;  %v222_v49 = vadd.f32 0.0625, %v218_v38  ;;  %v201_v55 = vmax.f32 %v197_v45, 0.0 }
  0x3a   : > { %v249_v30 = vmax.f32 %v245_v23, 0.0  ;;  %v250_v33 = vmax.f32 %v246_v27, 0.0  ;;  %v950_v35 = vmin.f32 %v199_v28, 1.0  ;;  %v956_v39 = vmin.f32 %v200_v31, 1.0 }
  0x3b   : > { %v952_v36 = vmin.f32 %v224_v29, 1.0  ;;  %v958_v40 = vmin.f32 %v225_v32, 1.0  ;;  %v226_v56 = vmax.f32 %v222_v49, 0.0  ;;  %v239_v62 = vmul.f32 1.25, %v628_v57 }
  0x3c   : > { %v954_v37 = vmin.f32 %v249_v30, 1.0  ;;  %v960_v41 = vmin.f32 %v250_v33, 1.0  ;;  %v990_v63 = vmin.f32 %v201_v55, 1.0  ;;  %v190_v1 = vmul.f32 1.25, %v186_v58 }
  0x3d   : > { %v257_v42 = vmax.f32 %v950_v35, %v952_v36  ;;  %v265_v43 = vmin.f32 %v950_v35, %v952_v36  ;;  %v258_v44 = vmax.f32 %v956_v39, %v958_v40  ;;  %v266_v48 = vmin.f32 %v956_v39, %v958_v40 }
  0x3e   : > { %v992_v0 = vmin.f32 %v226_v56, 1.0  ;;  %v243_v2 = vmin.f32 %v239_v62, 1.0  ;;  %v215_v3 = vmul.f32 1.25, %v625_v60  ;;  %v240_v4 = vmul.f32 1.25, %v629_v61 }
  0x3f   : > { %v969_v46 = vmax.f32 %v257_v42, %v954_v37  ;;  %v269_v47 = vmin.f32 %v265_v43, %v954_v37  ;;  %v975_v50 = vmax.f32 %v258_v44, %v960_v41  ;;  %v270_v52 = vmin.f32 %v266_v48, %v960_v41 }
  0x40   : > { %v309_v5 = vsub.f32 %v954_v37, %v950_v35  ;;  %v313_v6 = vsub.f32 %v950_v35, %v952_v36  ;;  %v194_v7 = vmin.f32 %v190_v1, 1.0  ;;  %vm301_vm0 = vcmp.ge.f32.partialorder %v952_v36, %v954_v37 }
  0x41   : > { %v978_v51 = vsub.f32 %v969_v46, %v269_v47  ;;  %v983_v54 = vsub.f32 %v975_v50, %v270_v52  ;;  %v247_v8 = vadd.f32 0.0625, %v243_v2  ;;  %v219_v9 = vmin.f32 %v215_v3, 1.0 }
  0x42   : > { %v244_v10 = vmin.f32 %v240_v4, 1.0  ;;  %v259_v11 = vmax.f32 %v990_v63, %v992_v0  ;;  %v198_v12 = vadd.f32 0.0625, %v194_v7  ;;  %v267_v14 = vmin.f32 %v990_v63, %v992_v0 }
  0x43   : > { %v277_v53 = vadd.f32 1e-08, %v978_v51  ;;  %v278_v59 = vadd.f32 1e-08, %v983_v54  ;;  %v251_v13 = vmax.f32 %v247_v8, 0.0  ;;  %v223_v15 = vadd.f32 0.0625, %v219_v9 }
  0x44   : > { %v248_v16 = vadd.f32 0.0625, %v244_v10  ;;  %v305_v17 = vsub.f32 %v952_v36, %v954_v37  ;;  %v317_v18 = vsel %vm301_vm0, %v309_v5, %v313_v6  ;;  %v310_v19 = vsub.f32 %v960_v41, %v956_v39 }
  0x45   : > { %753 = vrcp.f32 %v277_v53  ;;  %v202_v20 = vmax.f32 %v198_v12, 0.0  ;;  %vm297_vm1 = vcmp.eq.f32.partialorder %v950_v35, %v969_v46  ;;  %v314_v21 = vsub.f32 %v956_v39, %v958_v40 }
  0x46   : > { %755 = vrcp.f32 %v278_v59  ;;  %v1015_v22 = vmin.f32 %v251_v13, 1.0  ;;  %v227_v23 = vmax.f32 %v223_v15, 0.0  ;;  %vm302_vm2 = vcmp.ge.f32.partialorder %v958_v40, %v960_v41 }
  0x47   : > { %v1019_v25 = vmin.f32 %v202_v20, 1.0  ;;  %v252_v26 = vmax.f32 %v248_v16, 0.0  ;;  %v823_v28 = vmov 4.0   ;;  %v321_v33 = vsel %vm297_vm1, %v305_v17, %v317_v18 }
  0x48   : > { %v325_v29 = vsel %vm301_vm0, 2.0, %v823_v28  ;;  %v1026_v30 = vmax.f32 %v259_v11, %v1015_v22  ;;  %v271_v31 = vmin.f32 %v267_v14, %v1015_v22  ;;  %vm298_vm3 = vcmp.eq.f32.partialorder %v956_v39, %v975_v50 }
  0x49   : > { %v306_v34 = vsub.f32 %v958_v40, %v960_v41  ;;  %v1036_v38 = vmin.f32 %v227_v23, 1.0  ;;  %v318_v42 = vsel %vm302_vm2, %v310_v19, %v314_v21  ;;  %v329_v44 = vsel %vm297_vm1, 0.0, %v325_v29 }
  0x4a   : > { %v1042_v43 = vsub.f32 %v1026_v30, %v271_v31  ;;  %v326_v45 = vsel %vm302_vm2, 2.0, %v823_v28  ;;  %v1051_v47 = vmin.f32 %v252_v26, 1.0  ;;  %v369_v52 = vmul.f32 1.2, %v978_v51 }
  0x4b   : > { %v260_v48 = vmax.f32 %v1019_v25, %v1036_v38  ;;  %v322_v35 = vsel %vm298_vm3, %v306_v34, %v318_v42  ;;  %v370_v56 = vmul.f32 1.2, %v983_v54  ;;  %v268_v41 = vmin.f32 %v1019_v25, %v1036_v38 }
  0x4c   : > { %v279_v55 = vadd.f32 1e-08, %v1042_v43  ;;  %v330_v51 = vsel %vm298_vm3, 0.0, %v326_v45  ;;  %v1071_v61 = vmin.f32 %v369_v52, %v969_v46  ;;  %v311_v1 = vsub.f32 %v1015_v22, %v990_v63 }
  0x4d   : > { %v1062_v40 = vmax.f32 %v260_v48, %v1051_v47  ;;  %v1074_v62 = vmin.f32 %v370_v56, %v975_v50  ;;  %v315_v2 = vsub.f32 %v990_v63, %v992_v0  ;;  %vm303_vm5 = vcmp.ge.f32.partialorder %v992_v0, %v1015_v22 }
  0x4e   : > { %757 = vrcp.f32 %v279_v55  ;;  %v307_v5 = vsub.f32 %v992_v0, %v1015_v22  ;;  %v327_v9 = vsel %vm303_vm5, 2.0, %v823_v28  ;;  %vm299_vm7 = vcmp.eq.f32.partialorder %v990_v63, %v1026_v30 }
  0x4f   : > { %v754_v24 = vpop.eup %753  ;;  %v319_v11 = vsel %vm303_vm5, %v311_v1, %v315_v2  ;;  %v1093_v12 = vsub.f32 %v969_v46, %v1071_v61  ;;  %v1097_v0 = vsub.f32 %v975_v50, %v1074_v62  ;;  %v312_v14 = vsub.f32 %v1051_v47, %v1019_v25 }
  0x50   : > { %v285_v27 = vmul.f32 %v754_v24, %v277_v53  ;;  %v756_v32 = vpop.eup %755  ;;  %v316_v63 = vsub.f32 %v1019_v25, %v1036_v38  ;;  %v323_v18 = vsel %vm299_vm7, %v307_v5, %v319_v11  ;;  %v331_v19 = vsel %vm299_vm7, 0.0, %v327_v9 }
  0x51   : > { %v286_v37 = vmul.f32 %v756_v32, %v278_v59  ;;  %v272_v59 = vmin.f32 %v268_v41, %v1051_v47  ;;  %vm304_vm9 = vcmp.ge.f32.partialorder %v1036_v38, %v1051_v47  ;;  %v308_v46 = vsub.f32 %v1036_v38, %v1051_v47 }
  0x52   : > { %v289_v36 = vsub.f32 2.0, %v285_v27  ;;  %v328_v23 = vsel %vm304_vm9, 2.0, %v823_v28  ;;  %vm300_vm11 = vcmp.eq.f32.partialorder %v1019_v25, %v1062_v40  ;;  %v320_v31 = vsel %vm304_vm9, %v312_v14, %v316_v63 }
  0x53   : > { %v290_v53 = vsub.f32 2.0, %v286_v37  ;;  %v1081_v3 = vsub.f32 %v1062_v40, %v272_v59  ;;  %v332_v37 = vsel %vm300_vm11, 0.0, %v328_v23 }
  0x54   : > { %v293_v49 = vmul.f32 %v754_v24, %v289_v36 }
  0x55   : > { %v294_v58 = vmul.f32 %v756_v32, %v290_v53  ;;  %v280_v6 = vadd.f32 1e-08, %v1081_v3  ;;  %v324_v53 = vsel %vm300_vm11, %v308_v46, %v320_v31 }
  0x56   : > { %v333_v57 = vmul.f32 %v321_v33, %v293_v49 }
  0x57   : > { %v334_v54 = vmul.f32 %v322_v35, %v294_v58  ;;  %759 = vrcp.f32 %v280_v6 }
  0x58   : > { %v337_v60 = vadd.f32 %v333_v57, %v329_v44  ;;  %v758_v17 = vpop.eup %757 }
  0x59   : > { %v338_v4 = vadd.f32 %v334_v54, %v330_v51  ;;  %v287_v21 = vmul.f32 %v758_v17, %v279_v55 }
  0x5a   : > { %vm341_vm4 = vcmp.lt.f32.partialorder %v337_v60, 0.0  ;;  %v345_v39 = vadd.f32 6.0, %v337_v60 }
  0x5b   : > { %vm342_vm6 = vcmp.lt.f32.partialorder %v338_v4, 0.0  ;;  %v346_v8 = vadd.f32 6.0, %v338_v4  ;;  %v291_v29 = vsub.f32 2.0, %v287_v21 }
  0x5c   : > { %v349_v7 = vsel %vm341_vm4, %v345_v39, %v337_v60 }
  0x5d   : > { %v353_v10 = vadd.f32 0.15, %v349_v7  ;;  %v350_v13 = vsel %vm342_vm6, %v346_v8, %v338_v4  ;;  %v295_v38 = vmul.f32 %v758_v17, %v291_v29 }
  0x5e   : > { %v354_v16 = vadd.f32 0.15, %v350_v13 }
  0x5f   : > { %vm357_vm8 = vcmp.ge.f32.partialorder %v353_v10, 6.0  ;;  %v630_v15 = vadd.f32 -6.0, %v353_v10  ;;  %v335_v52 = vmul.f32 %v323_v18, %v295_v38 }
  0x60   : > { %vm358_vm10 = vcmp.ge.f32.partialorder %v354_v16, 6.0  ;;  %v631_v20 = vadd.f32 -6.0, %v354_v16 }
  0x61   : > { %v365_v50 = vsel %vm357_vm8, %v630_v15, %v353_v10  ;;  %v760_v49 = vpop.eup %759  ;;  %v339_v51 = vadd.f32 %v335_v52, %v331_v19 }
  0x62   : > { %v634_v22 = vadd.f32 -3.0, %v365_v50  ;;  %v642_v24 = vadd.f32 -2.0, %v365_v50  ;;  %v646_v26 = vadd.f32 -4.0, %v365_v50  ;;  %v366_v27 = vsel %vm358_vm10, %v631_v20, %v354_v16 }
  0x63   : > { %v635_v33 = vadd.f32 -3.0, %v366_v27  ;;  %v643_v36 = vadd.f32 -2.0, %v366_v27  ;;  %v647_v44 = vadd.f32 -4.0, %v366_v27  ;;  %v288_v57 = vmul.f32 %v760_v49, %v280_v6 }
  0x64   : > { %v385_v32 = vand.u32 2147483647, %v634_v22  ;;  %v413_v34 = vand.u32 2147483647, %v642_v24  ;;  %v441_v42 = vand.u32 2147483647, %v646_v26 }
  0x65   : > { %v386_v45 = vand.u32 2147483647, %v635_v33  ;;  %v414_v48 = vand.u32 2147483647, %v643_v36  ;;  %v442_v35 = vand.u32 2147483647, %v647_v44 }
  0x66   : > { %v638_v28 = vadd.f32 -1.0, %v385_v32  ;;  %v417_v47 = vsub.f32 2.0, %v413_v34  ;;  %v445_v55 = vsub.f32 2.0, %v441_v42  ;;  %v292_v39 = vsub.f32 2.0, %v288_v57 }
  0x67   : > { %v639_v41 = vadd.f32 -1.0, %v386_v45  ;;  %v418_v59 = vsub.f32 2.0, %v414_v48  ;;  %v446_v54 = vsub.f32 2.0, %v442_v35  ;;  %vm343_vm12 = vcmp.lt.f32.partialorder %v339_v51, 0.0 }
  0x68   : > { %v393_v56 = vmax.f32 %v638_v28, 0.0  ;;  %v421_v58 = vmax.f32 %v417_v47, 0.0  ;;  %v449_v60 = vmax.f32 %v445_v55, 0.0  ;;  %v347_v5 = vadd.f32 6.0, %v339_v51 }
  0x69   : > { %v394_v2 = vmax.f32 %v639_v41, 0.0  ;;  %v422_v7 = vmax.f32 %v418_v59, 0.0  ;;  %v296_v10 = vmul.f32 %v760_v49, %v292_v39  ;;  %v450_v15 = vmax.f32 %v446_v54, 0.0 }
  0x6a   : > { %v397_v1 = vmin.f32 %v393_v56, 1.0  ;;  %v425_v4 = vmin.f32 %v421_v58, 1.0  ;;  %v453_v8 = vmin.f32 %v449_v60, 1.0  ;;  %v351_v11 = vsel %vm343_vm12, %v347_v5, %v339_v51 }
  0x6b   : > { %v398_v9 = vmin.f32 %v394_v2, 1.0  ;;  %v426_v13 = vmin.f32 %v422_v7, 1.0  ;;  %v355_v17 = vadd.f32 0.15, %v351_v11  ;;  %v336_v18 = vmul.f32 %v324_v53, %v296_v10 }
  0x6c   : > { %v401_v25 = vmul.f32 %v397_v1, %v1071_v61  ;;  %v429_v6 = vmul.f32 %v425_v4, %v1071_v61  ;;  %v457_v14 = vmul.f32 %v453_v8, %v1071_v61  ;;  %v454_v20 = vmin.f32 %v450_v15, 1.0 }
  0x6d   : > { %v402_v63 = vmul.f32 %v398_v9, %v1074_v62  ;;  %v430_v46 = vmul.f32 %v426_v13, %v1074_v62  ;;  %vm359_vm13 = vcmp.ge.f32.partialorder %v355_v17, 6.0  ;;  %v632_v21 = vadd.f32 -6.0, %v355_v17 }
  0x6e   : > { %v405_v16 = vadd.f32 %v401_v25, %v1093_v12  ;;  %v433_v19 = vadd.f32 %v429_v6, %v1093_v12  ;;  %v461_v50 = vadd.f32 %v457_v14, %v1093_v12  ;;  %v340_v22 = vadd.f32 %v336_v18, %v332_v37 }
  0x6f   : > { %v406_v61 = vadd.f32 %v402_v63, %v1097_v0  ;;  %v434_v23 = vadd.f32 %v430_v46, %v1097_v0  ;;  %v458_v12 = vmul.f32 %v454_v20, %v1074_v62  ;;  %v367_v24 = vsel %vm359_vm13, %v632_v21, %v355_v17 }
  0x70   : > { %465 = vst [vmem:[%s1126_s16] sm:$0xff] %v405_v16  ;;  %650 = vst [vmem:[%s1126_s16 + $0x20] sm:$0xff] %v433_v19  ;;  %v371_v26 = vmul.f32 1.2, %v1042_v43  ;;  %vm344_vm14 = vcmp.lt.f32.partialorder %v340_v22, 0.0  ;;  %v348_v27 = vadd.f32 6.0, %v340_v22  ;;  %v636_v29 = vadd.f32 -3.0, %v367_v24 }
  0x71   : > { %654 = vst [vmem:[%s1126_s16 + $0x40] sm:$0xff] %v461_v50  ;;  %466 = vst [vmem:[%s1126_s16 + $0x8] sm:$0xff] %v406_v61  ;;  %v644_v31 = vadd.f32 -2.0, %v367_v24  ;;  %v462_v32 = vadd.f32 %v458_v12, %v1097_v0  ;;  %v648_v33 = vadd.f32 -4.0, %v367_v24  ;;  %v372_v49 = vmul.f32 1.2, %v1081_v3 }
  0x72   : > { %651 = vst [vmem:[%s1126_s16 + $0x28] sm:$0xff] %v434_v23  ;;  %v352_v34 = vsel %vm344_vm14, %v348_v27, %v340_v22  ;;  %v387_v36 = vand.u32 2147483647, %v636_v29  ;;  %v375_v42 = vmin.f32 %v371_v26, %v1026_v30 }
  0x73   : > { %v356_v38 = vadd.f32 0.15, %v352_v34  ;;  %v415_v37 = vand.u32 2147483647, %v644_v31  ;;  %655 = vst [vmem:[%s1126_s16 + $0x48] sm:$0xff] %v462_v32  ;;  %v376_v2 = vmin.f32 %v372_v49, %v1062_v40 }
  0x74   : > { %v443_v62 = vand.u32 2147483647, %v648_v33  ;;  %v640_v44 = vadd.f32 -1.0, %v387_v36  ;;  %v379_v56 = vsub.f32 %v1026_v30, %v375_v42 }
  0x75   : > { %vm360_vm15 = vcmp.ge.f32.partialorder %v356_v38, 6.0  ;;  %v633_v28 = vadd.f32 -6.0, %v356_v38  ;;  %v419_v43 = vsub.f32 2.0, %v415_v37  ;;  %v380_v6 = vsub.f32 %v1062_v40, %v376_v2 }
  0x76   : > { %v447_v45 = vsub.f32 2.0, %v443_v62  ;;  %v395_v47 = vmax.f32 %v640_v44, 0.0 }
  0x77   : > { %v368_v48 = vsel %vm360_vm15, %v633_v28, %v356_v38  ;;  %v423_v52 = vmax.f32 %v419_v43, 0.0 }
  0x78   : > { %v637_v0 = vadd.f32 -3.0, %v368_v48  ;;  %v645_v53 = vadd.f32 -2.0, %v368_v48  ;;  %v451_v55 = vmax.f32 %v447_v45, 0.0  ;;  %v649_v35 = vadd.f32 -4.0, %v368_v48 }
  0x79   : > { %v399_v41 = vmin.f32 %v395_v47, 1.0  ;;  %v427_v57 = vmin.f32 %v423_v52, 1.0 }
  0x7a   : > { %v388_v58 = vand.u32 2147483647, %v637_v0  ;;  %v416_v51 = vand.u32 2147483647, %v645_v53  ;;  %v455_v59 = vmin.f32 %v451_v55, 1.0 }
  0x7b   : > { %v403_v60 = vmul.f32 %v399_v41, %v375_v42  ;;  %v431_v54 = vmul.f32 %v427_v57, %v375_v42  ;;  %v444_v1 = vand.u32 2147483647, %v649_v35 }
  0x7c   : > { %v641_v3 = vadd.f32 -1.0, %v388_v58  ;;  %v420_v39 = vsub.f32 2.0, %v416_v51  ;;  %v459_v4 = vmul.f32 %v455_v59, %v375_v42 }
  0x7d   : > { %v407_v5 = vadd.f32 %v403_v60, %v379_v56  ;;  %v435_v7 = vadd.f32 %v431_v54, %v379_v56  ;;  %v448_v8 = vsub.f32 2.0, %v444_v1 }
  0x7e   : > { %v396_v30 = vmax.f32 %v641_v3, 0.0  ;;  %v424_v25 = vmax.f32 %v420_v39, 0.0  ;;  %v463_v9 = vadd.f32 %v459_v4, %v379_v56 }
  0x7f   : > { %467 = vst [vmem:[%s1126_s16 + $0x10] sm:$0xff] %v407_v5  ;;  %652 = vst [vmem:[%s1126_s16 + $0x30] sm:$0xff] %v435_v7  ;;  %v452_v10 = vmax.f32 %v448_v8, 0.0 }
  0x80   : > { %v400_v11 = vmin.f32 %v396_v30, 1.0  ;;  %v428_v13 = vmin.f32 %v424_v25, 1.0  ;;  %656 = vst [vmem:[%s1126_s16 + $0x50] sm:$0xff] %v463_v9 }
  0x81   : > { %v456_v14 = vmin.f32 %v452_v10, 1.0 }
  0x82   : > { %v404_v15 = vmul.f32 %v400_v11, %v376_v2  ;;  %v432_v16 = vmul.f32 %v428_v13, %v376_v2 }
  0x83   : > { %v460_v63 = vmul.f32 %v456_v14, %v376_v2 }
  0x84   : > { %v408_v17 = vadd.f32 %v404_v15, %v380_v6  ;;  %v436_v18 = vadd.f32 %v432_v16, %v380_v6 }
  0x85   : > { %v464_v19 = vadd.f32 %v460_v63, %v380_v6 }
  0x86   : > { %468 = vst [vmem:[%s1126_s16 + $0x18] sm:$0xff] %v408_v17  ;;  %653 = vst [vmem:[%s1126_s16 + $0x38] sm:$0xff] %v436_v18 }
  0x87   : > { %657 = vst [vmem:[%s1126_s16 + $0x58] sm:$0xff] %v464_v19 }
  0x88   : > { %s666_s28 = sshll.u32 %s807_s9, 9  ;;  %s512_s29 = sshll.u32 %s1126_s16, 4  ;;  %s513_s29 = int_to_ptr.vmem [resolvable:$true] %s512_s29 }
  0x89   : > { %s495_s3 = scalar_lea.hbm %s1194_s1, %s666_s28  ;;  %s824_s4 = smov 512  }
  0x8a   : > { %678 = sst [smem:[#allocation9]] (%p892_p9), %s824_s4  ;;  %s825_s5 = smov 1024  }
  0x8b   : > { %679 = sst [smem:[#allocation9 + $0x1]] (%p892_p9), %s825_s5  ;;  %s826_s12 = smov 2  }
  0x8c   : > { %680 = sst [smem:[#allocation9 + $0x2]] (%p892_p9), %s826_s12  ;;  %s827_s13 = smov 256  }
  0x8d   : > { %681 = sst [smem:[#allocation9 + $0x3]] (%p892_p9), %s827_s13  ;;  %s828_s9 = smov 16  }
  0x8e   : > { %682 = sst [smem:[#allocation9 + $0x4]] (%p892_p9), %s827_s13  ;;  %s829_s15 = smov [#allocation8]  }
  0x8f   : > { %683 = sst [smem:[#allocation9 + $0x5]] (%p892_p9), %s828_s9  ;;  %s830_s17 = smov 0  }
  0x90   : > { %684 = dma.general (%p892_p9), %s513_s29, 1536, %s495_s3, %s480_s18, %s829_s15, [#allocation9], %s830_s17, 0  }
  0x91 PF: > { %s540_s23 = sand.u32 1, %s795_s6   ;;  %p687_p2 = pnand %p615_p12, %p899_p11 }
  0x92   : > { %s541_s24 = scalar_lea.sflag [#allocation4], %s540_s23 }
  0x93   : > { %790 = dma.done.wait (!%p687_p2), %s541_s24, 1536  }
  0x94   : > { %792 = vsyncadd (!%p687_p2), %s541_s24, 4294965760  ;;  %s17_s11 = sadd.s32 1, %s815_s11   ;;  %s1199_s6 = smov %s799_s7 }
  0x95   : > { %p14_p3 = scmp.ge.s32.totalorder %s17_s11, 4   ;;  %s1200_s7 = smov %s803_s8 }
  0x96   : > { %s1201_s8 = smov %s897_s20  ;;  %s1202_s9 = smov %s811_s10 }
  0x97   : > { %s1203_s10 = smov %s1205_s14  ;;  %16 = sbr.rel (!%p14_p3) target bundleno = 6 (0x6), region = 83 }
  0x9e   :  { %546 = vsyncpa [#allocation3], 1 }
  0x9f   :  { %548 = vsyncpa [#allocation3 + $0x1], 1 }
  0xa0   :  { %549 = vsyncpa [#allocation4], 1 }
  0xa1   :  { %551 = vsyncpa [#allocation4 + $0x1], 1 }

</bundles_post_ra>
